<compile_context>
chip_gen: v6e
topology: v6e:2x2x1
jax: 0.10.0
libtpu: 0.0.40
codegen_flags: <defaults>
</compile_context>

<pallas_src>
import jax
import jax.numpy as jnp
from jax.experimental import pallas as pl
from jax.experimental.pallas import tpu as pltpu

HIDDEN = 256
FEAT_PAD = 128        # pad state_dim + action_dim up to a multiple of this
OUT_PAD = 128         # lane-dense output width (q1 in lane 0, q2 in lane 1)
BATCH_TILE = 256      # batch block for the gridded (large-batch) path
GRID_MIN_BATCH = 2 * BATCH_TILE   # switch to the batch grid at/above this batch


def _critic1_kernel(sa_ref, w14_ref, w25_ref, w36_ref, bias_ref, out_ref):
    """Both Q heads computed entirely in VMEM.

    out_ref is (Bt, 128) lane-dense: q1 in lane 0, q2 in lane 1, zeros elsewhere.
    """
    sa = sa_ref[...]            # (Bt, in_pad)  bf16
    bias = bias_ref[...]        # (3, 512)      f32

    # Layer 1 of both heads fused: one wide matmul on the shared input.
    h = jnp.dot(sa, w14_ref[...], preferred_element_type=jnp.float32)   # (Bt, 512)
    h = jnp.maximum(h + bias[0:1, :], 0.0)

    # Layer 2: split at the clean 256-lane boundary, one dot per head.
    h1 = h[:, :HIDDEN].astype(jnp.bfloat16)
    h2 = h[:, HIDDEN:].astype(jnp.bfloat16)
    g1 = jnp.dot(h1, w25_ref[0], preferred_element_type=jnp.float32)
    g2 = jnp.dot(h2, w25_ref[1], preferred_element_type=jnp.float32)
    g1 = jnp.maximum(g1 + bias[1:2, :HIDDEN], 0.0).astype(jnp.bfloat16)
    g2 = jnp.maximum(g2 + bias[1:2, HIDDEN:], 0.0).astype(jnp.bfloat16)

    # Layer 3: block-diagonal, lane-dense final layer WITHOUT materializing a
    # (Bt, 512) concat (lane-dim concats are not views): two dots + a VPU add.
    q = (jnp.dot(g1, w36_ref[:HIDDEN, :], preferred_element_type=jnp.float32)
         + jnp.dot(g2, w36_ref[HIDDEN:, :], preferred_element_type=jnp.float32))
    out_ref[...] = q + bias[2:3, :OUT_PAD]          # single unmasked 128-lane store


def init_critic1_params(key, state_dim, action_dim):
    """Per-layer f32 params mirroring PyTorch nn.Linear default init.

    Weights are stored transposed vs. PyTorch, i.e. (in_features, out_features);
    biases are (1, out_features).
    """
    in_dim = state_dim + action_dim
    dims = [(in_dim, HIDDEN), (HIDDEN, HIDDEN), (HIDDEN, 1),   # l1, l2, l3
            (in_dim, HIDDEN), (HIDDEN, HIDDEN), (HIDDEN, 1)]   # l4, l5, l6
    params = []
    keys = jax.random.split(key, 2 * len(dims))
    for i, (fan_in, fan_out) in enumerate(dims):
        bound = 1.0 / jnp.sqrt(jnp.float32(fan_in))
        w = jax.random.uniform(keys[2 * i], (fan_in, fan_out),
                               minval=-bound, maxval=bound, dtype=jnp.float32)
        b = jax.random.uniform(keys[2 * i + 1], (1, fan_out),
                               minval=-bound, maxval=bound, dtype=jnp.float32)
        params.append((w, b))
    return params


def pack_critic1_params(params):
    """Fuse / pad / quantize the 12 per-layer tensors into 4 kernel arrays."""
    (w1, b1), (w2, b2), (w3, b3), (w4, b4), (w5, b5), (w6, b6) = params
    in_dim = w1.shape[0]
    in_pad = ((in_dim + FEAT_PAD - 1) // FEAT_PAD) * FEAT_PAD

    w14 = jnp.concatenate([w1, w4], axis=1)                       # (in_dim, 512)
    w14 = jnp.pad(w14, ((0, in_pad - in_dim), (0, 0)))            # zero feature rows

    w25 = jnp.stack([w2, w5], axis=0)                             # (2, 256, 256)

    # Block-diagonal, lane-dense final layer: (512, 128).
    #   rows 0..255 hold w3 in lane 0; rows 256..511 hold w6 in lane 1.
    w36 = jnp.zeros((2 * HIDDEN, OUT_PAD), jnp.float32)
    w36 = w36.at[:HIDDEN, 0:1].set(w3)
    w36 = w36.at[HIDDEN:, 1:2].set(w6)

    row0 = jnp.concatenate([b1, b4], axis=1)                      # (1, 512)
    row1 = jnp.concatenate([b2, b5], axis=1)                      # (1, 512)
    row2 = jnp.pad(jnp.concatenate([b3, b6], axis=1),
                   ((0, 0), (0, 2 * HIDDEN - 2)))                 # (1, 512)
    bias = jnp.concatenate([row0, row1, row2], axis=0)            # (3, 512) f32

    # TODO(synk): optionally quantize W14/W25 to int8 (v5e/v6e) or fp8 (v7x) with
    # per-channel scales once the critic's TD-target drift budget is confirmed.
    return (w14.astype(jnp.bfloat16),
            w25.astype(jnp.bfloat16),
            w36.astype(jnp.bfloat16),
            bias.astype(jnp.float32))


def _critic1_call(sa_p, w14, w25, w36, bias):
    """Dispatch to the gridless (small-batch) or batch-gridded (large-batch) path."""
    padded_b, in_pad = sa_p.shape

    cost = pl.CostEstimate(
        flops=2 * padded_b * (in_pad * 2 * HIDDEN
                              + 2 * HIDDEN * HIDDEN
                              + 2 * HIDDEN * OUT_PAD),
        transcendentals=0,
        bytes_accessed=(2 * (w14.size + w25.size + w36.size) + 4 * bias.size
                        + 2 * padded_b * in_pad + 4 * padded_b * OUT_PAD),
    )
    out_shape = jax.ShapeDtypeStruct((padded_b, OUT_PAD), jnp.float32)

    if padded_b >= GRID_MIN_BATCH:
        # Large-batch path: 1-D "parallel" batch grid -> uses both TensorCores on
        # v7x, pipelines activation/output DMAs with compute, bounds VMEM.
        # Constant index_maps keep weight/bias blocks VMEM-resident across steps.
        grid_spec = pltpu.PrefetchScalarGridSpec(
            num_scalar_prefetch=0,
            grid=(padded_b // BATCH_TILE,),
            in_specs=[
                pl.BlockSpec((BATCH_TILE, in_pad), lambda i: (i, 0)),
                pl.BlockSpec(w14.shape, lambda i: (0, 0)),
                pl.BlockSpec(w25.shape, lambda i: (0, 0, 0)),
                pl.BlockSpec(w36.shape, lambda i: (0, 0)),
                pl.BlockSpec(bias.shape, lambda i: (0, 0)),
            ],
            out_specs=pl.BlockSpec((BATCH_TILE, OUT_PAD), lambda i: (i, 0)),
        )
        return pl.pallas_call(
            _critic1_kernel,
            out_shape=out_shape,
            grid_spec=grid_spec,
            compiler_params=pltpu.CompilerParams(
                dimension_semantics=("parallel",)),
            cost_estimate=cost,
        )(sa_p, w14, w25, w36, bias)

    # Small / inference-batch path: whole problem in one VMEM block, no grid
    # (per-step grid overhead would dominate at RL critic batch sizes).
    vmem = pl.BlockSpec(memory_space=pltpu.MemorySpace.VMEM)
    return pl.pallas_call(
        _critic1_kernel,
        out_shape=out_shape,
        in_specs=[vmem] * 5,
        out_specs=vmem,
        cost_estimate=cost,
    )(sa_p, w14, w25, w36, bias)


def critic1_forward(state, action, packed):
    """Returns (q1, q2), each (B, 1) f32, matching Critic1.forward semantics."""
    w14, w25, w36, bias = packed
    in_pad = w14.shape[0]

    sa = jnp.concatenate([state, action], axis=1).astype(jnp.float32)
    batch, feat = sa.shape

    # bf16 activations; pad batch to a 16-row multiple (bf16 sublane packing) for
    # the gridless path or to a BATCH_TILE multiple for the gridded path, and pad
    # features with zeros to the zero-row-padded weight height (benign padding).
    if batch >= GRID_MIN_BATCH:
        padded_b = ((batch + BATCH_TILE - 1) // BATCH_TILE) * BATCH_TILE
    else:
        padded_b = max(16, ((batch + 15) // 16) * 16)
    sa_p = jnp.pad(sa.astype(jnp.bfloat16),
                   ((0, padded_b - batch), (0, in_pad - feat)))

    out = _critic1_call(sa_p, w14, w25, w36, bias)
    return out[:batch, 0:1], out[:batch, 1:2]


def _packed_reference(state, action, packed):
    """Plain-JAX reference that mirrors the kernel's bf16 arithmetic exactly."""
    w14, w25, w36, bias = packed
    in_pad = w14.shape[0]
    sa = jnp.concatenate([state, action], axis=1).astype(jnp.float32)
    sa_b = jnp.pad(sa.astype(jnp.bfloat16), ((0, 0), (0, in_pad - sa.shape[1])))
    h = jnp.dot(sa_b, w14, preferred_element_type=jnp.float32)
    h = jnp.maximum(h + bias[0:1, :], 0.0)
    h1 = h[:, :HIDDEN].astype(jnp.bfloat16)
    h2 = h[:, HIDDEN:].astype(jnp.bfloat16)
    g1 = jnp.maximum(jnp.dot(h1, w25[0], preferred_element_type=jnp.float32)
                     + bias[1:2, :HIDDEN], 0.0).astype(jnp.bfloat16)
    g2 = jnp.maximum(jnp.dot(h2, w25[1], preferred_element_type=jnp.float32)
                     + bias[1:2, HIDDEN:], 0.0).astype(jnp.bfloat16)
    q = (jnp.dot(g1, w36[:HIDDEN, :], preferred_element_type=jnp.float32)
         + jnp.dot(g2, w36[HIDDEN:, :], preferred_element_type=jnp.float32)
         + bias[2:3, :OUT_PAD])
    return q[:, 0:1], q[:, 1:2]


def _f32_reference(state, action, params):
    """Pure-f32 reference of the original PyTorch module (loose comparison)."""
    sa = jnp.concatenate([state, action], axis=1).astype(jnp.float32)
    (w1, b1), (w2, b2), (w3, b3), (w4, b4), (w5, b5), (w6, b6) = params
    q1 = jnp.maximum(sa @ w1 + b1, 0.0)
    q1 = jnp.maximum(q1 @ w2 + b2, 0.0)
    q1 = q1 @ w3 + b3
    q2 = jnp.maximum(sa @ w4 + b4, 0.0)
    q2 = jnp.maximum(q2 @ w5 + b5, 0.0)
    q2 = q2 @ w6 + b6
    return q1, q2


if __name__ == "__main__":
    key = jax.random.PRNGKey(0)
    k_state, k_action, k_params, k_state2, k_action2 = jax.random.split(key, 5)

    state_dim, action_dim = 8, 4
    params = init_critic1_params(k_params, state_dim, action_dim)
    packed = pack_critic1_params(params)

    # --- small batch: gridless single-VMEM-block path ---
    batch = 2
    state = jax.random.normal(k_state, (batch, state_dim), dtype=jnp.float32)
    action = jax.random.normal(k_action, (batch, action_dim), dtype=jnp.float32)

    q1, q2 = critic1_forward(state, action, packed)
    jax.block_until_ready((q1, q2))
    assert q1.shape == (batch, 1) and q2.shape == (batch, 1)

    # Tight check against a plain-JAX reference using identical bf16 arithmetic.
    q1_p, q2_p = _packed_reference(state, action, packed)
    assert jnp.allclose(q1, q1_p, atol=1e-3, rtol=1e-3), "q1 mismatch vs packed ref"
    assert jnp.allclose(q2, q2_p, atol=1e-3, rtol=1e-3), "q2 mismatch vs packed ref"

    # Loose check against the full-f32 PyTorch-semantics reference
    # (bf16 weight/activation quantization introduces ~1e-2-level differences).
    q1_f, q2_f = _f32_reference(state, action, params)
    assert jnp.allclose(q1, q1_f, atol=5e-2, rtol=5e-2), "q1 drifted vs f32 ref"
    assert jnp.allclose(q2, q2_f, atol=5e-2, rtol=5e-2), "q2 drifted vs f32 ref"

    # --- larger batch: exercises the 1-D "parallel" batch-grid path ---
    big_batch = GRID_MIN_BATCH + 17   # deliberately not a tile multiple
    state_b = jax.random.normal(k_state2, (big_batch, state_dim), dtype=jnp.float32)
    action_b = jax.random.normal(k_action2, (big_batch, action_dim),
                                 dtype=jnp.float32)
    q1_b, q2_b = critic1_forward(state_b, action_b, packed)
    jax.block_until_ready((q1_b, q2_b))
    assert q1_b.shape == (big_batch, 1) and q2_b.shape == (big_batch, 1)
    q1_bp, q2_bp = _packed_reference(state_b, action_b, packed)
    assert jnp.allclose(q1_b, q1_bp, atol=1e-3, rtol=1e-3), "q1 mismatch (grid path)"
    assert jnp.allclose(q2_b, q2_bp, atol=1e-3, rtol=1e-3), "q2 mismatch (grid path)"

    print("KERNEL_OK")
</pallas_src>

<mosaic_0001>
module attributes {stable_mosaic.version = 11 : i64} {
  func.func @_critic1_kernel(%arg0: memref<16x128xbf16, #tpu.memory_space<vmem>>, %arg1: memref<128x512xbf16, #tpu.memory_space<vmem>>, %arg2: memref<2x256x256xbf16, #tpu.memory_space<vmem>>, %arg3: memref<512x128xbf16, #tpu.memory_space<vmem>>, %arg4: memref<3x512xf32, #tpu.memory_space<vmem>>, %arg5: memref<16x128xf32, #tpu.memory_space<vmem>>) attributes {dimension_semantics = [], scalar_prefetch = 0 : i64, scratch_operands = 0 : i64, tpu.core_type = #tpu.core_type<tc>} {
    %c0 = arith.constant 0 : index
    %c0_0 = arith.constant 0 : index
    %0 = vector.load %arg0[%c0, %c0_0] : memref<16x128xbf16, #tpu.memory_space<vmem>>, vector<16x128xbf16>
    %c0_1 = arith.constant 0 : index
    %c0_2 = arith.constant 0 : index
    %1 = vector.load %arg4[%c0_1, %c0_2] : memref<3x512xf32, #tpu.memory_space<vmem>>, vector<3x512xf32>
    %c0_3 = arith.constant 0 : index
    %c0_4 = arith.constant 0 : index
    %2 = vector.load %arg1[%c0_3, %c0_4] : memref<128x512xbf16, #tpu.memory_space<vmem>>, vector<128x512xbf16>
    %cst = arith.constant dense<0.000000e+00> : vector<16x512xf32>
    %3 = tpu.matmul %0, %2, %cst {dimension_numbers = #tpu.dot_dimension_numbers<[1], [0], [0], [1], [0, 0, 1, 1], [], []>} : vector<16x128xbf16>, vector<128x512xbf16>, vector<16x512xf32> -> vector<16x512xf32>
    %4 = vector.extract_strided_slice %1 {offsets = [0, 0], sizes = [1, 512], strides = [1, 1]} : vector<3x512xf32> to vector<1x512xf32>
    %5 = vector.broadcast %4 : vector<1x512xf32> to vector<16x512xf32>
    %6 = arith.addf %3, %5 : vector<16x512xf32>
    %cst_5 = arith.constant 0.000000e+00 : f32
    %7 = vector.broadcast %cst_5 : f32 to vector<16x512xf32>
    %8 = arith.maximumf %6, %7 : vector<16x512xf32>
    %9 = vector.extract_strided_slice %8 {offsets = [0, 0], sizes = [16, 256], strides = [1, 1]} : vector<16x512xf32> to vector<16x256xf32>
    %10 = arith.truncf %9 : vector<16x256xf32> to vector<16x256xbf16>
    %11 = vector.extract_strided_slice %8 {offsets = [0, 256], sizes = [16, 256], strides = [1, 1]} : vector<16x512xf32> to vector<16x256xf32>
    %12 = arith.truncf %11 : vector<16x256xf32> to vector<16x256xbf16>
    %c0_6 = arith.constant 0 : index
    %c0_7 = arith.constant 0 : index
    %c0_8 = arith.constant 0 : index
    %13 = vector.load %arg2[%c0_6, %c0_7, %c0_8] : memref<2x256x256xbf16, #tpu.memory_space<vmem>>, vector<1x256x256xbf16>
    %14 = vector.shape_cast %13 : vector<1x256x256xbf16> to vector<256x256xbf16>
    %cst_9 = arith.constant dense<0.000000e+00> : vector<16x256xf32>
    %15 = tpu.matmul %10, %14, %cst_9 {dimension_numbers = #tpu.dot_dimension_numbers<[1], [0], [0], [1], [0, 0, 1, 1], [], []>} : vector<16x256xbf16>, vector<256x256xbf16>, vector<16x256xf32> -> vector<16x256xf32>
    %c1 = arith.constant 1 : index
    %c0_10 = arith.constant 0 : index
    %c0_11 = arith.constant 0 : index
    %16 = vector.load %arg2[%c1, %c0_10, %c0_11] : memref<2x256x256xbf16, #tpu.memory_space<vmem>>, vector<1x256x256xbf16>
    %17 = vector.shape_cast %16 : vector<1x256x256xbf16> to vector<256x256xbf16>
    %cst_12 = arith.constant dense<0.000000e+00> : vector<16x256xf32>
    %18 = tpu.matmul %12, %17, %cst_12 {dimension_numbers = #tpu.dot_dimension_numbers<[1], [0], [0], [1], [0, 0, 1, 1], [], []>} : vector<16x256xbf16>, vector<256x256xbf16>, vector<16x256xf32> -> vector<16x256xf32>
    %19 = vector.extract_strided_slice %1 {offsets = [1, 0], sizes = [1, 256], strides = [1, 1]} : vector<3x512xf32> to vector<1x256xf32>
    %20 = vector.broadcast %19 : vector<1x256xf32> to vector<16x256xf32>
    %21 = arith.addf %15, %20 : vector<16x256xf32>
    %cst_13 = arith.constant 0.000000e+00 : f32
    %22 = vector.broadcast %cst_13 : f32 to vector<16x256xf32>
    %23 = arith.maximumf %21, %22 : vector<16x256xf32>
    %24 = arith.truncf %23 : vector<16x256xf32> to vector<16x256xbf16>
    %25 = vector.extract_strided_slice %1 {offsets = [1, 256], sizes = [1, 256], strides = [1, 1]} : vector<3x512xf32> to vector<1x256xf32>
    %26 = vector.broadcast %25 : vector<1x256xf32> to vector<16x256xf32>
    %27 = arith.addf %18, %26 : vector<16x256xf32>
    %cst_14 = arith.constant 0.000000e+00 : f32
    %28 = vector.broadcast %cst_14 : f32 to vector<16x256xf32>
    %29 = arith.maximumf %27, %28 : vector<16x256xf32>
    %30 = arith.truncf %29 : vector<16x256xf32> to vector<16x256xbf16>
    %c0_15 = arith.constant 0 : index
    %c0_16 = arith.constant 0 : index
    %31 = vector.load %arg3[%c0_15, %c0_16] : memref<512x128xbf16, #tpu.memory_space<vmem>>, vector<256x128xbf16>
    %cst_17 = arith.constant dense<0.000000e+00> : vector<16x128xf32>
    %32 = tpu.matmul %24, %31, %cst_17 {dimension_numbers = #tpu.dot_dimension_numbers<[1], [0], [0], [1], [0, 0, 1, 1], [], []>} : vector<16x256xbf16>, vector<256x128xbf16>, vector<16x128xf32> -> vector<16x128xf32>
    %c256 = arith.constant 256 : index
    %c0_18 = arith.constant 0 : index
    %33 = vector.load %arg3[%c256, %c0_18] : memref<512x128xbf16, #tpu.memory_space<vmem>>, vector<256x128xbf16>
    %cst_19 = arith.constant dense<0.000000e+00> : vector<16x128xf32>
    %34 = tpu.matmul %30, %33, %cst_19 {dimension_numbers = #tpu.dot_dimension_numbers<[1], [0], [0], [1], [0, 0, 1, 1], [], []>} : vector<16x256xbf16>, vector<256x128xbf16>, vector<16x128xf32> -> vector<16x128xf32>
    %35 = arith.addf %32, %34 : vector<16x128xf32>
    %36 = vector.extract_strided_slice %1 {offsets = [2, 0], sizes = [1, 128], strides = [1, 1]} : vector<3x512xf32> to vector<1x128xf32>
    %37 = vector.broadcast %36 : vector<1x128xf32> to vector<16x128xf32>
    %38 = arith.addf %35, %37 : vector<16x128xf32>
    %c0_20 = arith.constant 0 : index
    %c0_21 = arith.constant 0 : index
    %39 = vector.load %arg5[%c0_20, %c0_21] : memref<16x128xf32, #tpu.memory_space<vmem>>, vector<16x128xf32>
    tpu.vector_store %arg5[%c0_20, %c0_21], %38 {strides = array<i32>} : memref<16x128xf32, #tpu.memory_space<vmem>>, vector<16x128xf32>,
    return
  }
}

</mosaic_0001>

<bundles_post_ra>
// kernel: tpu_custom_call.1
= control target key start
LH: loop header
LB: loop body
LE: loop exit
PB: predicated region body
PF: predicated region fallthrough
CT: control target
= control target key end

     0   :  { %10 = vsyncpa [#allocation3], 0  ;;  %s1888_s0 = inlined_call_operand.hbm [shape: bf16[16,128], index: 0, kind: input, shape index: {}]   ;;  %s1889_s1 = inlined_call_operand.hbm [shape: bf16[128,512], index: 1, kind: input, shape index: {}]   ;;  %s1890_s2 = inlined_call_operand.hbm [shape: bf16[2,256,256], index: 2, kind: input, shape index: {}]   ;;  %s1891_s3 = inlined_call_operand.hbm [shape: bf16[512,128], index: 3, kind: input, shape index: {}]   ;;  %s1892_s4 = inlined_call_operand.hbm [shape: f32[3,512], index: 4, kind: input, shape index: {}]   ;;  %s1893_s5 = inlined_call_operand.hbm [shape: f32[16,128], index: 5, kind: output, shape index: {}]  }
   0x1   :  { %11 = vsyncpa [#allocation6], 0 }
   0x2   :  { %12 = vsyncpa [#allocation9], 0 }
   0x3   :  { %13 = vsyncpa [#allocation4], 0  ;;  %s1801_s18 = smov [#allocation5]  }
   0x4   :  { %s31_s19 = sshll.u32 %s1801_s18, 4  ;;  %s32_s19 = int_to_ptr.vmem [resolvable:$true] %s31_s19 }
   0x5   :  { %s1681_s20 = scalar_lea.vmem %s32_s19, 4096  ;;  %p1686_p1 = scmp.lt.s32.totalorder %s32_s19, %s32_s19 }
   0x6   :  { %p1682_p0 = scmp.ne.s32.totalorder %s32_s19, %s1681_s20  ;;  %p1687_p2 = scmp.lt.s32.totalorder %s1681_s20, %s1681_s20 }
   0x8   :  { %p1688_p3 = por %p1687_p2, %p1686_p1 }
   0xa   :  { %p1689_p4 = pnand %p1688_p3, %p1682_p0 }
   0xc   :  { %1692 = shalt.err (!%p1689_p4)
}
   0xd   :  { %s1802_s21 = smov 256   ;;  %s1803_s22 = smov 16  }
   0xe   :  { %37 = dma.hbm_to_vmem [thread:$0]  %s1889_s1, 4096, %s32_s19, [#allocation6], %s1802_s21, %s1802_s21, %s1803_s22  }
   0xf   :  { %s1804_s25 = smov [#allocation8]   ;;  %s1805_s27 = smov [#allocation2]  }
  0x10   :  { %s55_s26 = sshll.u32 %s1804_s25, 4  ;;  %s19_s28 = sshll.u32 %s1805_s27, 4  ;;  %s56_s26 = int_to_ptr.vmem [resolvable:$true] %s55_s26  ;;  %s20_s28 = int_to_ptr.vmem [resolvable:$true] %s19_s28 }
  0x11   :  { %s1701_s29 = scalar_lea.vmem %s56_s26, 4096  ;;  %p1706_p6 = scmp.lt.s32.totalorder %s56_s26, %s56_s26 }
  0x12   :  { %p1702_p5 = scmp.ne.s32.totalorder %s56_s26, %s1701_s29  ;;  %p1707_p7 = scmp.lt.s32.totalorder %s1701_s29, %s1701_s29 }
  0x14   :  { %p1708_p8 = por %p1707_p7, %p1706_p6 }
  0x16   :  { %p1709_p9 = pnand %p1708_p8, %p1702_p5 }
  0x18   :  { %1712 = shalt.err (!%p1709_p9)
}
  0x19   :  { %s1806_s30 = smov 64   ;;  %s1807_s6 = smov 4  }
  0x1a   :  { %61 = dma.hbm_to_vmem [thread:$0]  %s1891_s3, 4096, %s56_s26, [#allocation9], %s1806_s30, %s1806_s30, %s1807_s6  }
  0x1b   :  { %s1721_s1 = scalar_lea.vmem %s20_s28, 128  ;;  %p1726_p11 = scmp.lt.s32.totalorder %s20_s28, %s20_s28 }
  0x1c   :  { %p1722_p10 = scmp.ne.s32.totalorder %s20_s28, %s1721_s1  ;;  %p1727_p12 = scmp.lt.s32.totalorder %s1721_s1, %s1721_s1 }
  0x1e   :  { %p1728_p13 = por %p1727_p12, %p1726_p11 }
  0x20   :  { %p1729_p0 = pnand %p1728_p13, %p1722_p10 }
  0x22   :  { %1732 = shalt.err (!%p1729_p0)
}
  0x23   :  { %25 = dma.hbm_to_vmem [thread:$0]  %s1888_s0, 128, %s20_s28, [#allocation3], %s1806_s30, %s1806_s30, %s1807_s6  }
  0x24   :  { %s1808_s11 = smov [#allocation7]  }
  0x25   :  { %s43_s12 = sshll.u32 %s1808_s11, 4  ;;  %s44_s12 = int_to_ptr.vmem [resolvable:$true] %s43_s12 }
  0x26   :  { %s1741_s13 = scalar_lea.vmem %s44_s12, 8192  ;;  %p1746_p2 = scmp.lt.s32.totalorder %s44_s12, %s44_s12 }
  0x27   :  { %p1742_p1 = scmp.ne.s32.totalorder %s44_s12, %s1741_s13  ;;  %p1747_p3 = scmp.lt.s32.totalorder %s1741_s13, %s1741_s13 }
  0x29   :  { %p1748_p4 = por %p1747_p3, %p1746_p2 }
  0x2b   :  { %p1749_p5 = pnand %p1748_p4, %p1742_p1 }
  0x2d   :  { %1752 = shalt.err (!%p1749_p5)
}
  0x2e   :  { %s1809_s3 = smov 128   ;;  %s1810_s14 = smov 8  }
  0x2f   :  { %49 = dma.hbm_to_vmem [thread:$0]  %s1890_s2, 8192, %s44_s12, [#allocation6], %s1809_s3, %s1809_s3, %s1810_s14  }
  0x30   :  { %s1811_s0 = smov [#allocation10]  }
  0x31   :  { %s68_s17 = sshll.u32 %s1811_s0, 4  ;;  %s69_s17 = int_to_ptr.vmem [resolvable:$true] %s68_s17 }
  0x32   :  { %s1761_s18 = scalar_lea.vmem %s69_s17, 256  ;;  %p1766_p7 = scmp.lt.s32.totalorder %s69_s17, %s69_s17 }
  0x33   :  { %p1762_p6 = scmp.ne.s32.totalorder %s69_s17, %s1761_s18  ;;  %p1767_p8 = scmp.lt.s32.totalorder %s1761_s18, %s1761_s18 }
  0x35   :  { %p1768_p9 = por %p1767_p8, %p1766_p7 }
  0x37   :  { %p1769_p10 = pnand %p1768_p9, %p1762_p6 }
  0x39   :  { %1772 = shalt.err (!%p1769_p10)
}
  0x3a   :  { %71 = dma.hbm_to_vmem [thread:$0]  %s1892_s4, 256, %s69_s17, [#allocation9]  }
  0x3b   :  { %1793 = dma.done.wait [#allocation3], 128  }
  0x3c   :  { %1794 = vsyncadd [#allocation3], 4294967168 }
  0x3d   :  { %1795 = dma.done.wait [#allocation6], 12288  }
  0x3e   :  { %1796 = vsyncadd [#allocation6], 4294955008 }
  0x3f   :  { %1797 = dma.done.wait [#allocation9], 4352  }
  0x40   :  { %1798 = vsyncadd [#allocation9], 4294962944  ;;  %v1812_v0 = vmov 0   ;;  %v1496_v1 = vld [vmem:[#allocation5 + $0xe4] ss:$16 sps:$4 sm:$0xff]   ;;  %v1544_v35 = vld [vmem:[#allocation2] sm:$0xff]  }
  0x41   :  { %360 = vmatprep.mubr.bf16.mxu0 %v1812_v0  ;;  %403 = vmatprep.mubr.bf16.mxu1 %v1812_v0  ;;  %v1498_v2 = vld [vmem:[#allocation5 + $0xec] ss:$16 sps:$4 sm:$0xff]   ;;  %v1500_v3 = vld [vmem:[#allocation5 + $0xe0] ss:$16 sps:$4 sm:$0xff]   ;;  %v1501_v4 = vld [vmem:[#allocation5 + $0xe8] ss:$16 sps:$4 sm:$0xff]  }
  0x42   :  { %328 = vmatprep.subr.bf16.mxu0 %v1496_v1  ;;  %371 = vmatprep.subr.bf16.mxu1 %v1498_v2  ;;  %v1502_v5 = vld [vmem:[#allocation5 + $0xc4] ss:$16 sps:$4 sm:$0xff]   ;;  %v1504_v6 = vld [vmem:[#allocation5 + $0xcc] ss:$16 sps:$4 sm:$0xff]   ;;  %v1506_v7 = vld [vmem:[#allocation5 + $0xc0] ss:$16 sps:$4 sm:$0xff]  }
  0x43   :  { %329 = vmatpush1.bf16.msra.mxu0 %v1500_v3  ;;  %372 = vmatpush1.bf16.msra.mxu1 %v1501_v4  ;;  %v1507_v8 = vld [vmem:[#allocation5 + $0xc8] ss:$16 sps:$4 sm:$0xff]   ;;  %v1508_v9 = vld [vmem:[#allocation5 + $0xa4] ss:$16 sps:$4 sm:$0xff]   ;;  %v1510_v10 = vld [vmem:[#allocation5 + $0xac] ss:$16 sps:$4 sm:$0xff]  }
  0x44   :  { %330 = vmatprep.subr.bf16.mxu0 %v1502_v5  ;;  %373 = vmatprep.subr.bf16.mxu1 %v1504_v6  ;;  %v1512_v11 = vld [vmem:[#allocation5 + $0xa0] ss:$16 sps:$4 sm:$0xff]   ;;  %v1513_v12 = vld [vmem:[#allocation5 + $0xa8] ss:$16 sps:$4 sm:$0xff]   ;;  %v1514_v13 = vld [vmem:[#allocation5 + $0x84] ss:$16 sps:$4 sm:$0xff]  }
  0x45   :  { %v1516_v14 = vld [vmem:[#allocation5 + $0x8c] ss:$16 sps:$4 sm:$0xff]   ;;  %v1518_v15 = vld [vmem:[#allocation5 + $0x80] ss:$16 sps:$4 sm:$0xff]   ;;  %v1519_v16 = vld [vmem:[#allocation5 + $0x88] ss:$16 sps:$4 sm:$0xff]  }
  0x46   :  { %v1520_v17 = vld [vmem:[#allocation5 + $0x64] ss:$16 sps:$4 sm:$0xff]   ;;  %v1522_v18 = vld [vmem:[#allocation5 + $0x6c] ss:$16 sps:$4 sm:$0xff]   ;;  %v1524_v19 = vld [vmem:[#allocation5 + $0x60] ss:$16 sps:$4 sm:$0xff]  }
  0x47   :  { %331 = vmatpush1.bf16.msra.mxu0 %v1506_v7  ;;  %374 = vmatpush1.bf16.msra.mxu1 %v1507_v8  ;;  %v1525_v20 = vld [vmem:[#allocation5 + $0x68] ss:$16 sps:$4 sm:$0xff]   ;;  %v1526_v21 = vld [vmem:[#allocation5 + $0x44] ss:$16 sps:$4 sm:$0xff]   ;;  %v1528_v22 = vld [vmem:[#allocation5 + $0x4c] ss:$16 sps:$4 sm:$0xff]  }
  0x48   :  { %332 = vmatprep.subr.bf16.mxu0 %v1508_v9  ;;  %375 = vmatprep.subr.bf16.mxu1 %v1510_v10  ;;  %v1530_v23 = vld [vmem:[#allocation5 + $0x40] ss:$16 sps:$4 sm:$0xff]   ;;  %v1531_v24 = vld [vmem:[#allocation5 + $0x48] ss:$16 sps:$4 sm:$0xff]   ;;  %v1532_v25 = vld [vmem:[#allocation5 + $0x24] ss:$16 sps:$4 sm:$0xff]  }
  0x49   :  { %v1534_v26 = vld [vmem:[#allocation5 + $0x2c] ss:$16 sps:$4 sm:$0xff]   ;;  %v1536_v27 = vld [vmem:[#allocation5 + $0x20] ss:$16 sps:$4 sm:$0xff]   ;;  %v1537_v28 = vld [vmem:[#allocation5 + $0x28] ss:$16 sps:$4 sm:$0xff]  }
  0x4a   :  { %v1538_v29 = vld [vmem:[#allocation5 + $0x4] ss:$16 sps:$4 sm:$0xff]   ;;  %v1540_v30 = vld [vmem:[#allocation5 + $0xc] ss:$16 sps:$4 sm:$0xff]   ;;  %v1542_v31 = vld [vmem:[#allocation5] ss:$16 sps:$4 sm:$0xff]  }
  0x4b   :  { %333 = vmatpush1.bf16.msra.mxu0 %v1512_v11  ;;  %376 = vmatpush1.bf16.msra.mxu1 %v1513_v12  ;;  %v1543_v32 = vld [vmem:[#allocation5 + $0x8] ss:$16 sps:$4 sm:$0xff]   ;;  %v1547_v33 = vld [vmem:[#allocation7 + $0x74] ss:$8 sps:$4 sm:$0xff]   ;;  %v1553_v38 = vld [vmem:[#allocation7 + $0x64] ss:$8 sps:$4 sm:$0xff]  }
  0x4c   :  { %334 = vmatprep.subr.bf16.mxu0 %v1514_v13  ;;  %377 = vmatprep.subr.bf16.mxu1 %v1516_v14  ;;  %v1550_v34 = vld [vmem:[#allocation7 + $0x174] ss:$8 sps:$4 sm:$0xff]   ;;  %v1545_v36 = vld [vmem:[#allocation7 + $0x70] ss:$8 sps:$4 sm:$0xff]   ;;  %v1556_v39 = vld [vmem:[#allocation7 + $0x164] ss:$8 sps:$4 sm:$0xff]  }
  0x4d   :  { %v1548_v37 = vld [vmem:[#allocation7 + $0x170] ss:$8 sps:$4 sm:$0xff]   ;;  %v1551_v40 = vld [vmem:[#allocation7 + $0x60] ss:$8 sps:$4 sm:$0xff]   ;;  %v1559_v42 = vld [vmem:[#allocation7 + $0x54] ss:$8 sps:$4 sm:$0xff]  }
  0x4e   :  { %v1554_v41 = vld [vmem:[#allocation7 + $0x160] ss:$8 sps:$4 sm:$0xff]   ;;  %v1562_v43 = vld [vmem:[#allocation7 + $0x154] ss:$8 sps:$4 sm:$0xff]   ;;  %v1557_v44 = vld [vmem:[#allocation7 + $0x50] ss:$8 sps:$4 sm:$0xff]  }
  0x4f   :  { %335 = vmatpush1.bf16.msra.mxu0 %v1518_v15  ;;  %378 = vmatpush1.bf16.msra.mxu1 %v1519_v16  ;;  %v1560_v45 = vld [vmem:[#allocation7 + $0x150] ss:$8 sps:$4 sm:$0xff]   ;;  %v1565_v46 = vld [vmem:[#allocation7 + $0x44] ss:$8 sps:$4 sm:$0xff]   ;;  %v1563_v48 = vld [vmem:[#allocation7 + $0x40] ss:$8 sps:$4 sm:$0xff]  }
  0x50   :  { %336 = vmatprep.subr.bf16.mxu0 %v1520_v17  ;;  %379 = vmatprep.subr.bf16.mxu1 %v1522_v18  ;;  %v1568_v47 = vld [vmem:[#allocation7 + $0x144] ss:$8 sps:$4 sm:$0xff]   ;;  %v1566_v49 = vld [vmem:[#allocation7 + $0x140] ss:$8 sps:$4 sm:$0xff]   ;;  %v1571_v50 = vld [vmem:[#allocation7 + $0x34] ss:$8 sps:$4 sm:$0xff]  }
  0x51   :  { %v1574_v51 = vld [vmem:[#allocation7 + $0x134] ss:$8 sps:$4 sm:$0xff]   ;;  %v1569_v52 = vld [vmem:[#allocation7 + $0x30] ss:$8 sps:$4 sm:$0xff]   ;;  %v1577_v54 = vld [vmem:[#allocation7 + $0x24] ss:$8 sps:$4 sm:$0xff]  }
  0x52   :  { %v1572_v53 = vld [vmem:[#allocation7 + $0x130] ss:$8 sps:$4 sm:$0xff]   ;;  %v1580_v55 = vld [vmem:[#allocation7 + $0x124] ss:$8 sps:$4 sm:$0xff]   ;;  %v1575_v56 = vld [vmem:[#allocation7 + $0x20] ss:$8 sps:$4 sm:$0xff]  }
  0x53   :  { %337 = vmatpush1.bf16.msra.mxu0 %v1524_v19  ;;  %380 = vmatpush1.bf16.msra.mxu1 %v1525_v20  ;;  %v1578_v57 = vld [vmem:[#allocation7 + $0x120] ss:$8 sps:$4 sm:$0xff]   ;;  %v1583_v58 = vld [vmem:[#allocation7 + $0x14] ss:$8 sps:$4 sm:$0xff]   ;;  %v1581_v60 = vld [vmem:[#allocation7 + $0x10] ss:$8 sps:$4 sm:$0xff]  }
  0x54   :  { %338 = vmatprep.subr.bf16.mxu0 %v1526_v21  ;;  %381 = vmatprep.subr.bf16.mxu1 %v1528_v22  ;;  %v1586_v59 = vld [vmem:[#allocation7 + $0x114] ss:$8 sps:$4 sm:$0xff]   ;;  %v1584_v61 = vld [vmem:[#allocation7 + $0x110] ss:$8 sps:$4 sm:$0xff]   ;;  %v1589_v62 = vld [vmem:[#allocation7 + $0x4] ss:$8 sps:$4 sm:$0xff]  }
  0x55   :  { %v1592_v63 = vld [vmem:[#allocation7 + $0x104] ss:$8 sps:$4 sm:$0xff]   ;;  %v1587_v0 = vld [vmem:[#allocation7] ss:$8 sps:$4 sm:$0xff]   ;;  %v1595_v2 = vld [vmem:[#allocation7 + $0xf4] ss:$8 sps:$4 sm:$0xff]  }
  0x56   :  { %v1590_v1 = vld [vmem:[#allocation7 + $0x100] ss:$8 sps:$4 sm:$0xff]   ;;  %v1598_v3 = vld [vmem:[#allocation7 + $0x1f4] ss:$8 sps:$4 sm:$0xff]   ;;  %v1593_v4 = vld [vmem:[#allocation7 + $0xf0] ss:$8 sps:$4 sm:$0xff]  }
  0x57   :  { %339 = vmatpush1.bf16.msra.mxu0 %v1530_v23  ;;  %382 = vmatpush1.bf16.msra.mxu1 %v1531_v24  ;;  %v1596_v5 = vld [vmem:[#allocation7 + $0x1f0] ss:$8 sps:$4 sm:$0xff]   ;;  %v1601_v6 = vld [vmem:[#allocation7 + $0xe4] ss:$8 sps:$4 sm:$0xff]   ;;  %v1599_v8 = vld [vmem:[#allocation7 + $0xe0] ss:$8 sps:$4 sm:$0xff]  }
  0x58   :  { %340 = vmatprep.subr.bf16.mxu0 %v1532_v25  ;;  %383 = vmatprep.subr.bf16.mxu1 %v1534_v26  ;;  %v1604_v7 = vld [vmem:[#allocation7 + $0x1e4] ss:$8 sps:$4 sm:$0xff]   ;;  %v1602_v9 = vld [vmem:[#allocation7 + $0x1e0] ss:$8 sps:$4 sm:$0xff]   ;;  %v1607_v10 = vld [vmem:[#allocation7 + $0xd4] ss:$8 sps:$4 sm:$0xff]  }
  0x59   :  { %v1610_v11 = vld [vmem:[#allocation7 + $0x1d4] ss:$8 sps:$4 sm:$0xff]   ;;  %v1605_v12 = vld [vmem:[#allocation7 + $0xd0] ss:$8 sps:$4 sm:$0xff]   ;;  %v1613_v14 = vld [vmem:[#allocation7 + $0xc4] ss:$8 sps:$4 sm:$0xff]  }
  0x5a   :  { %v1608_v13 = vld [vmem:[#allocation7 + $0x1d0] ss:$8 sps:$4 sm:$0xff]   ;;  %v1616_v15 = vld [vmem:[#allocation7 + $0x1c4] ss:$8 sps:$4 sm:$0xff]   ;;  %v1611_v16 = vld [vmem:[#allocation7 + $0xc0] ss:$8 sps:$4 sm:$0xff]  }
  0x5b   :  { %341 = vmatpush1.bf16.msra.mxu0 %v1536_v27  ;;  %384 = vmatpush1.bf16.msra.mxu1 %v1537_v28  ;;  %v1614_v17 = vld [vmem:[#allocation7 + $0x1c0] ss:$8 sps:$4 sm:$0xff]   ;;  %v1619_v18 = vld [vmem:[#allocation7 + $0xb4] ss:$8 sps:$4 sm:$0xff]   ;;  %v1617_v20 = vld [vmem:[#allocation7 + $0xb0] ss:$8 sps:$4 sm:$0xff]  }
  0x5c   :  { %342 = vmatprep.subr.bf16.mxu0 %v1538_v29  ;;  %385 = vmatprep.subr.bf16.mxu1 %v1540_v30  ;;  %v1622_v19 = vld [vmem:[#allocation7 + $0x1b4] ss:$8 sps:$4 sm:$0xff]   ;;  %v1620_v21 = vld [vmem:[#allocation7 + $0x1b0] ss:$8 sps:$4 sm:$0xff]   ;;  %v1625_v22 = vld [vmem:[#allocation7 + $0xa4] ss:$8 sps:$4 sm:$0xff]  }
  0x5d   :  { %v1628_v23 = vld [vmem:[#allocation7 + $0x1a4] ss:$8 sps:$4 sm:$0xff]   ;;  %v1623_v24 = vld [vmem:[#allocation7 + $0xa0] ss:$8 sps:$4 sm:$0xff]   ;;  %v1631_v26 = vld [vmem:[#allocation7 + $0x94] ss:$8 sps:$4 sm:$0xff]  }
  0x5e   :  { %v1626_v25 = vld [vmem:[#allocation7 + $0x1a0] ss:$8 sps:$4 sm:$0xff]   ;;  %v1634_v27 = vld [vmem:[#allocation7 + $0x194] ss:$8 sps:$4 sm:$0xff]   ;;  %v1629_v28 = vld [vmem:[#allocation7 + $0x90] ss:$8 sps:$4 sm:$0xff]  }
  0x5f   :  { %343 = vmatpush1.bf16.msra.mxu0 %v1542_v31  ;;  %386 = vmatpush1.bf16.msra.mxu1 %v1543_v32  ;;  %v1632_v29 = vld [vmem:[#allocation7 + $0x190] ss:$8 sps:$4 sm:$0xff]   ;;  %v1637_v30 = vld [vmem:[#allocation7 + $0x84] ss:$8 sps:$4 sm:$0xff]   ;;  %v1635_v32 = vld [vmem:[#allocation7 + $0x80] ss:$8 sps:$4 sm:$0xff]  }
  0x60   :  { %669 = vmatprep.subr.bf16.mxu0 %v1547_v33  ;;  %896 = vmatprep.subr.bf16.mxu1 %v1550_v34  ;;  %v1640_v31 = vld [vmem:[#allocation7 + $0x184] ss:$8 sps:$4 sm:$0xff]   ;;  %v1638_v33 = vld [vmem:[#allocation7 + $0x180] ss:$8 sps:$4 sm:$0xff]   ;;  %v1641_v34 = vld [vmem:[#allocation8 + $0xf8] sm:$0xff]   ;;  %s1813_s2 = smov [#allocation11]  }
  0x61   :  { %s1296_s4 = sshll.u32 %s1813_s2, 4  ;;  %s1297_s4 = int_to_ptr.vmem [resolvable:$true] %s1296_s4 }
  0x62   :  { %361 = vmatmul.mubr.bf16.vlgmr.msra.gmra.mxu0 %v1544_v35  ;;  %404 = vmatmul.mubr.bf16.vlgmr.msra.gmra.mxu1 %v1544_v35  ;;  %v1642_v35 = vld [vmem:[#allocation8 + $0x78] sm:$0xff]   ;;  %s1773_s21 = scalar_lea.vmem %s1297_s4, 256  ;;  %p1778_p12 = scmp.lt.s32.totalorder %s1297_s4, %s1297_s4 }
  0x63   :  { %670 = vmatpush1.bf16.msra.mxu0 %v1545_v36  ;;  %897 = vmatpush1.bf16.msra.mxu1 %v1548_v37  ;;  %v126_v36 = vlaneseq  ;;  %p1774_p11 = scmp.ne.s32.totalorder %s1297_s4, %s1773_s21  ;;  %p1779_p13 = scmp.lt.s32.totalorder %s1773_s21, %s1773_s21 }
  0x64   :  { %671 = vmatprep.subr.bf16.mxu0 %v1553_v38  ;;  %898 = vmatprep.subr.bf16.mxu1 %v1556_v39 }
  0x65   :  { %v1862_v37 = vshrl.u32 %v126_v36, 7  ;;  %v1665_v36 = vld [vmem:[#allocation8 + $0xc8] sm:$0xff]   ;;  %p1780_p0 = por %p1779_p13, %p1778_p12 }
  0x67   :  { %672 = vmatpush1.bf16.msra.mxu0 %v1551_v40  ;;  %899 = vmatpush1.bf16.msra.mxu1 %v1554_v41  ;;  %v132_v38 = vsub.s32 4, %v1862_v37  ;;  %v128_v39 = vsub.s32 0, %v1862_v37  ;;  %v1866_v40 = vld [vmem:[#allocation10] sm:$0x77]  ;;  %v1868_v41 = vld [vmem:[#allocation10 + $0x8] sm:$0x77]  ;;  %p1781_p1 = pnand %p1780_p0, %p1774_p11 }
  0x68   :  { %673 = vmatprep.subr.bf16.mxu0 %v1559_v42  ;;  %900 = vmatprep.subr.bf16.mxu1 %v1562_v43 }
  0x69   :  { %v133_v42 = vrot.slane %v1866_v40, %v132_v38  ;;  %v141_v43 = vrot.slane %v1868_v41, %v132_v38  ;;  %v1666_v38 = vld [vmem:[#allocation8 + $0x48] sm:$0xff]  }
  0x6b   :  { %674 = vmatpush1.bf16.msra.mxu0 %v1557_v44  ;;  %901 = vmatpush1.bf16.msra.mxu1 %v1560_v45  ;;  %v129_v44 = vrot.slane %v1866_v40, %v128_v39  ;;  %v137_v45 = vrot.slane %v1868_v41, %v128_v39 }
  0x6c   :  { %675 = vmatprep.subr.bf16.mxu0 %v1565_v46  ;;  %902 = vmatprep.subr.bf16.mxu1 %v1568_v47 }
  0x6f   :  { %676 = vmatpush1.bf16.msra.mxu0 %v1563_v48  ;;  %903 = vmatpush1.bf16.msra.mxu1 %v1566_v49  ;;  %v153_v48 = vrot.slane %v133_v42, %v128_v39  ;;  %v161_v49 = vrot.slane %v141_v43, %v128_v39  ;;  %v1668_v42 = vld [vmem:[#allocation8 + $0x8] sm:$0xff]   ;;  %v1669_v43 = vld [vmem:[#allocation8 + $0xc0] sm:$0xff]  }
  0x70   :  { %677 = vmatprep.subr.bf16.mxu0 %v1571_v50  ;;  %904 = vmatprep.subr.bf16.mxu1 %v1574_v51  ;;  %v149_v50 = vrot.slane %v129_v44, %v128_v39  ;;  %v157_v51 = vrot.slane %v137_v45, %v128_v39  ;;  %v1667_v39 = vld [vmem:[#allocation8 + $0x88] sm:$0xff]   ;;  %v1670_v44 = vld [vmem:[#allocation8 + $0x40] sm:$0xff]  }
  0x71   :  { %v1671_v45 = vld [vmem:[#allocation8 + $0x80] sm:$0xff]  }
  0x73   :  { %678 = vmatpush1.bf16.msra.mxu0 %v1569_v52  ;;  %905 = vmatpush1.bf16.msra.mxu1 %v1572_v53 }
  0x74   :  { %679 = vmatprep.subr.bf16.mxu0 %v1577_v54  ;;  %906 = vmatprep.subr.bf16.mxu1 %v1580_v55 }
  0x77   :  { %680 = vmatpush1.bf16.msra.mxu0 %v1575_v56  ;;  %907 = vmatpush1.bf16.msra.mxu1 %v1578_v57 }
  0x78   :  { %681 = vmatprep.subr.bf16.mxu0 %v1583_v58  ;;  %908 = vmatprep.subr.bf16.mxu1 %v1586_v59 }
  0x7b   :  { %682 = vmatpush1.bf16.msra.mxu0 %v1581_v60  ;;  %909 = vmatpush1.bf16.msra.mxu1 %v1584_v61 }
  0x7c   :  { %683 = vmatprep.subr.bf16.mxu0 %v1589_v62  ;;  %910 = vmatprep.subr.bf16.mxu1 %v1592_v63 }
  0x7f   :  { %684 = vmatpush1.bf16.msra.mxu0 %v1587_v0  ;;  %911 = vmatpush1.bf16.msra.mxu1 %v1590_v1 }
  0x80   :  { %685 = vmatprep.subr.bf16.mxu0 %v1595_v2  ;;  %912 = vmatprep.subr.bf16.mxu1 %v1598_v3 }
  0x83   :  { %686 = vmatpush2.bf16.msra.mxu0 %v1593_v4  ;;  %913 = vmatpush2.bf16.msra.mxu1 %v1596_v5 }
  0x84   :  { %687 = vmatprep.subr.bf16.mxu0 %v1601_v6  ;;  %914 = vmatprep.subr.bf16.mxu1 %v1604_v7 }
  0x87   :  { %688 = vmatpush2.bf16.msra.mxu0 %v1599_v8  ;;  %915 = vmatpush2.bf16.msra.mxu1 %v1602_v9 }
  0x88   :  { %689 = vmatprep.subr.bf16.mxu0 %v1607_v10  ;;  %916 = vmatprep.subr.bf16.mxu1 %v1610_v11 }
  0x8b   :  { %690 = vmatpush2.bf16.msra.mxu0 %v1605_v12  ;;  %917 = vmatpush2.bf16.msra.mxu1 %v1608_v13  ;;  %v1643_v12 = vld [vmem:[#allocation8 + $0xb8] sm:$0xff]  }
  0x8c   :  { %691 = vmatprep.subr.bf16.mxu0 %v1613_v14  ;;  %918 = vmatprep.subr.bf16.mxu1 %v1616_v15  ;;  %v1644_v13 = vld [vmem:[#allocation8 + $0x38] sm:$0xff]  }
  0x8f   :  { %692 = vmatpush2.bf16.msra.mxu0 %v1611_v16  ;;  %919 = vmatpush2.bf16.msra.mxu1 %v1614_v17  ;;  %v1645_v16 = vld [vmem:[#allocation8 + $0xf0] sm:$0xff]  }
  0x90   :  { %693 = vmatprep.subr.bf16.mxu0 %v1619_v18  ;;  %920 = vmatprep.subr.bf16.mxu1 %v1622_v19  ;;  %v1646_v17 = vld [vmem:[#allocation8 + $0x70] sm:$0xff]  }
  0x91   :  { %v1647_v18 = vld [vmem:[#allocation8 + $0xb0] sm:$0xff]  }
  0x92   :  { %v1648_v19 = vld [vmem:[#allocation8 + $0x30] sm:$0xff]  }
  0x93   :  { %694 = vmatpush2.bf16.msra.mxu0 %v1617_v20  ;;  %921 = vmatpush2.bf16.msra.mxu1 %v1620_v21  ;;  %v1649_v20 = vld [vmem:[#allocation8 + $0xe8] sm:$0xff]  }
  0x94   :  { %695 = vmatprep.subr.bf16.mxu0 %v1625_v22  ;;  %922 = vmatprep.subr.bf16.mxu1 %v1628_v23  ;;  %v1650_v21 = vld [vmem:[#allocation8 + $0x68] sm:$0xff]  }
  0x95   :  { %v1651_v22 = vld [vmem:[#allocation8 + $0xa8] sm:$0xff]  }
  0x96   :  { %v1652_v23 = vld [vmem:[#allocation8 + $0x28] sm:$0xff]  }
  0x97   :  { %696 = vmatpush2.bf16.msra.mxu0 %v1623_v24  ;;  %923 = vmatpush2.bf16.msra.mxu1 %v1626_v25  ;;  %v1653_v24 = vld [vmem:[#allocation8 + $0xe0] sm:$0xff]  }
  0x98   :  { %697 = vmatprep.subr.bf16.mxu0 %v1631_v26  ;;  %924 = vmatprep.subr.bf16.mxu1 %v1634_v27  ;;  %v1654_v25 = vld [vmem:[#allocation8 + $0x60] sm:$0xff]  }
  0x99   :  { %v1655_v26 = vld [vmem:[#allocation8 + $0xa0] sm:$0xff]  }
  0x9a   :  { %v1656_v27 = vld [vmem:[#allocation8 + $0x20] sm:$0xff]  }
  0x9b   :  { %698 = vmatpush2.bf16.msra.mxu0 %v1629_v28  ;;  %925 = vmatpush2.bf16.msra.mxu1 %v1632_v29  ;;  %v1657_v28 = vld [vmem:[#allocation8 + $0xd8] sm:$0xff]  }
  0x9c   :  { %699 = vmatprep.subr.bf16.mxu0 %v1637_v30  ;;  %926 = vmatprep.subr.bf16.mxu1 %v1640_v31  ;;  %v1658_v29 = vld [vmem:[#allocation8 + $0x58] sm:$0xff]  }
  0x9d   :  { %v1659_v30 = vld [vmem:[#allocation8 + $0x98] sm:$0xff]  }
  0x9e   :  { %v1660_v31 = vld [vmem:[#allocation8 + $0x18] sm:$0xff]  }
  0x9f   :  { %700 = vmatpush2.bf16.msra.mxu0 %v1635_v32  ;;  %927 = vmatpush2.bf16.msra.mxu1 %v1638_v33  ;;  %v1661_v32 = vld [vmem:[#allocation8 + $0xd0] sm:$0xff]  }
  0xa0   :  { %1439 = vmatprep.subr.bf16.mxu0 %v1641_v34  ;;  %1461 = vmatprep.subr.bf16.mxu1 %v1642_v35  ;;  %v1662_v33 = vld [vmem:[#allocation8 + $0x50] sm:$0xff]  }
  0xa1   :  { %v1663_v34 = vld [vmem:[#allocation8 + $0x90] sm:$0xff]  }
  0xa2   :  { %v1664_v35 = vld [vmem:[#allocation8 + $0x10] sm:$0xff]  }
 0x122   :  { %v362_v46 = vpop.f32.mrf.mxu0  ;;  %v405_v47 = vpop.f32.mrf.mxu1 }
 0x123   :  { %v363_v60 = vadd.f32 %v362_v46, %v149_v50  ;;  %v406_v61 = vadd.f32 %v405_v47, %v157_v51  ;;  %v1672_v46 = vld [vmem:[#allocation8] sm:$0xff]   ;;  %v497_v47 = vsub.s32 5, %v1862_v37 }
 0x124   :  { %v364_v52 = vpop.f32.mrf.mxu0  ;;  %v407_v53 = vpop.f32.mrf.mxu1 }
 0x125   :  { %v365_v56 = vadd.f32 %v364_v52, %v153_v48  ;;  %v408_v57 = vadd.f32 %v407_v53, %v161_v49  ;;  %v414_v8 = vmax.f32 %v363_v60, 0.0  ;;  %v416_v9 = vmax.f32 %v406_v61, 0.0 }
 0x126   :  { %v366_v54 = vpop.f32.mrf.mxu0  ;;  %v409_v55 = vpop.f32.mrf.mxu1 }
 0x127   :  { %v367_v58 = vadd.f32 %v366_v54, %v149_v50  ;;  %v410_v59 = vadd.f32 %v409_v55, %v157_v51  ;;  %v415_v4 = vmax.f32 %v365_v56, 0.0  ;;  %v417_v5 = vmax.f32 %v408_v57, 0.0 }
 0x128   :  { %v368_v62 = vpop.f32.mrf.mxu0  ;;  %v411_v63 = vpop.f32.mrf.mxu1  ;;  %v725_v50 = vrot.slane %v1868_v41, %v497_v47 }
 0x129   :  { %v369_v0 = vadd.f32 %v368_v62, %v153_v48  ;;  %v412_v1 = vadd.f32 %v411_v63, %v161_v49  ;;  %v418_v2 = vmax.f32 %v367_v58, 0.0  ;;  %v420_v3 = vmax.f32 %v410_v59, 0.0 }
 0x12a   :  { %v493_v48 = vsub.s32 1, %v1862_v37  ;;  %v498_v49 = vrot.slane %v1866_v40, %v497_v47 }
 0x12b   :  { %v419_v6 = vmax.f32 %v369_v0, 0.0  ;;  %v421_v7 = vmax.f32 %v412_v1, 0.0  ;;  %v422_v14 = vpack.c.bf16 %v418_v2, %v414_v8  ;;  %v424_v15 = vpack.c.bf16 %v420_v3, %v416_v9 }
 0x12c   :  { %v494_v51 = vrot.slane %v1866_v40, %v493_v48  ;;  %v721_v52 = vrot.slane %v1868_v41, %v493_v48  ;;  %v508_v55 = vrot.slane %v498_v49, %v493_v48  ;;  %v735_v56 = vrot.slane %v725_v50, %v493_v48 }
 0x12d   :  { %v423_v10 = vpack.c.bf16 %v419_v6, %v415_v4  ;;  %v425_v11 = vpack.c.bf16 %v421_v7, %v417_v5 }
 0x12e   :  { %v504_v57 = vrot.slane %v494_v51, %v493_v48  ;;  %v731_v58 = vrot.slane %v721_v52, %v493_v48 }
 0x12f   :  { %701 = vmatprep.mubr.bf16.mxu0 %v423_v10  ;;  %928 = vmatprep.mubr.bf16.mxu1 %v425_v11 }
 0x130   :  { %702 = vmatmul.mubr.bf16.vlgmr.msra.gmra.mxu0 %v422_v14  ;;  %929 = vmatmul.mubr.bf16.vlgmr.msra.gmra.mxu1 %v424_v15 }
 0x131   :  { %1440 = vmatpush3.bf16.msra.mxu0 %v1643_v12  ;;  %1462 = vmatpush3.bf16.msra.mxu1 %v1644_v13 }
 0x132   :  { %1441 = vmatprep.subr.bf16.mxu0 %v1645_v16  ;;  %1463 = vmatprep.subr.bf16.mxu1 %v1646_v17 }
 0x135   :  { %1442 = vmatpush3.bf16.msra.mxu0 %v1647_v18  ;;  %1464 = vmatpush3.bf16.msra.mxu1 %v1648_v19 }
 0x136   :  { %1443 = vmatprep.subr.bf16.mxu0 %v1649_v20  ;;  %1465 = vmatprep.subr.bf16.mxu1 %v1650_v21  ;;  %v1285_v20 = vsub.s32 2, %v1862_v37 }
 0x139   :  { %1444 = vmatpush3.bf16.msra.mxu0 %v1651_v22  ;;  %1466 = vmatpush3.bf16.msra.mxu1 %v1652_v23 }
 0x13a   :  { %1445 = vmatprep.subr.bf16.mxu0 %v1653_v24  ;;  %1467 = vmatprep.subr.bf16.mxu1 %v1654_v25 }
 0x13d   :  { %1446 = vmatpush3.bf16.msra.mxu0 %v1655_v26  ;;  %1468 = vmatpush3.bf16.msra.mxu1 %v1656_v27  ;;  %v1286_v27 = vrot.slane %v1866_v40, %v1285_v20 }
 0x13e   :  { %1447 = vmatprep.subr.bf16.mxu0 %v1657_v28  ;;  %1469 = vmatprep.subr.bf16.mxu1 %v1658_v29 }
 0x141   :  { %1448 = vmatpush3.bf16.msra.mxu0 %v1659_v30  ;;  %1470 = vmatpush3.bf16.msra.mxu1 %v1660_v31 }
 0x142   :  { %1449 = vmatprep.subr.bf16.mxu0 %v1661_v32  ;;  %1471 = vmatprep.subr.bf16.mxu1 %v1662_v33 }
 0x145   :  { %1450 = vmatpush3.bf16.msra.mxu0 %v1663_v34  ;;  %1472 = vmatpush3.bf16.msra.mxu1 %v1664_v35 }
 0x146   :  { %1451 = vmatprep.subr.bf16.mxu0 %v1665_v36  ;;  %1473 = vmatprep.subr.bf16.mxu1 %v1666_v38 }
 0x149   :  { %1452 = vmatpush3.bf16.msra.mxu0 %v1667_v39  ;;  %1474 = vmatpush3.bf16.msra.mxu1 %v1668_v42 }
 0x14a   :  { %1453 = vmatprep.subr.bf16.mxu0 %v1669_v43  ;;  %1475 = vmatprep.subr.bf16.mxu1 %v1670_v44 }
 0x14d   :  { %1454 = vmatpush3.bf16.msra.mxu0 %v1671_v45  ;;  %1476 = vmatpush3.bf16.msra.mxu1 %v1672_v46 }
 0x1f0   :  { %v703_v53 = vpop.f32.mrf.mxu0  ;;  %v930_v54 = vpop.f32.mrf.mxu1 }
 0x1f1   :  { %v704_v3 = vadd.f32 %v703_v53, %v504_v57  ;;  %v931_v4 = vadd.f32 %v930_v54, %v731_v58 }
 0x1f2   :  { %v705_v59 = vpop.f32.mrf.mxu0  ;;  %v932_v60 = vpop.f32.mrf.mxu1 }
 0x1f3   :  { %v706_v63 = vadd.f32 %v705_v59, %v508_v55  ;;  %v933_v0 = vadd.f32 %v932_v60, %v735_v56  ;;  %v712_v14 = vmax.f32 %v704_v3, 0.0  ;;  %v939_v15 = vmax.f32 %v931_v4, 0.0 }
 0x1f4   :  { %v707_v61 = vpop.f32.mrf.mxu0  ;;  %v934_v62 = vpop.f32.mrf.mxu1 }
 0x1f5   :  { %v708_v1 = vadd.f32 %v707_v61, %v504_v57  ;;  %v935_v2 = vadd.f32 %v934_v62, %v731_v58  ;;  %v713_v10 = vmax.f32 %v706_v63, 0.0  ;;  %v940_v11 = vmax.f32 %v933_v0, 0.0 }
 0x1f6   :  { %v709_v5 = vpop.f32.mrf.mxu0  ;;  %v936_v6 = vpop.f32.mrf.mxu1 }
 0x1f7   :  { %v710_v7 = vadd.f32 %v709_v5, %v508_v55  ;;  %v937_v41 = vadd.f32 %v936_v6, %v735_v56  ;;  %v714_v8 = vmax.f32 %v708_v1, 0.0  ;;  %v941_v9 = vmax.f32 %v935_v2, 0.0 }
 0x1f9   :  { %v715_v12 = vmax.f32 %v710_v7, 0.0  ;;  %v942_v13 = vmax.f32 %v937_v41, 0.0  ;;  %v716_v18 = vpack.c.bf16 %v714_v8, %v712_v14  ;;  %v943_v19 = vpack.c.bf16 %v941_v9, %v939_v15 }
 0x1fb   :  { %v717_v16 = vpack.c.bf16 %v715_v12, %v713_v10  ;;  %v944_v17 = vpack.c.bf16 %v942_v13, %v940_v11 }
 0x1fd   :  { %1137 = vmatprep.mubr.bf16.mxu0 %v944_v17  ;;  %1274 = vmatprep.mubr.bf16.mxu1 %v717_v16 }
 0x1fe   :  { %1138 = vmatmul.mubr.bf16.vlgmr.msra.gmra.mxu0 %v943_v19  ;;  %1275 = vmatmul.mubr.bf16.vlgmr.msra.gmra.mxu1 %v716_v18 }
 0x2be   :  { %v1455_v21 = vpop.f32.mrf.mxu0  ;;  %v1477_v22 = vpop.f32.mrf.mxu1 }
 0x2c0   :  { %v1456_v23 = vpop.f32.mrf.mxu0  ;;  %v1478_v24 = vpop.f32.mrf.mxu1 }
 0x2c1   :  { %v1457_v25 = vadd.f32 %v1456_v23, %v1455_v21  ;;  %v1479_v26 = vadd.f32 %v1478_v24, %v1477_v22 }
 0x2c2   :  { %v1458_v28 = vpop.f32.mrf.mxu0  ;;  %v1480_v29 = vpop.f32.mrf.mxu1 }
 0x2c3   :  { %v1277_v30 = vadd.f32 %v1479_v26, %v1457_v25 }
 0x2c4   :  { %v1459_v31 = vpop.f32.mrf.mxu0  ;;  %v1481_v32 = vpop.f32.mrf.mxu1 }
 0x2c5   :  { %v1287_v33 = vadd.f32 %v1286_v27, %v1277_v30  ;;  %v1460_v34 = vadd.f32 %v1459_v31, %v1458_v28  ;;  %v1482_v35 = vadd.f32 %v1481_v32, %v1480_v29 }
 0x2c7   :  { %1289 = vst [vmem:[#allocation11] sm:$0xff] %v1287_v33  ;;  %v1280_v37 = vadd.f32 %v1482_v35, %v1460_v34 }
 0x2c9   :  { %v1288_v36 = vadd.f32 %v1286_v27, %v1280_v37 }
 0x2cb   :  { %1290 = vst [vmem:[#allocation11 + $0x8] sm:$0xff] %v1288_v36 }
 0x2cc   :  { %1784 = shalt.err (!%p1781_p1)
}
 0x2cd   :  { %1302 = dma.vmem_to_hbm [thread:$0]  %s1297_s4, 256, %s1893_s5, [#allocation4], %s1809_s3, %s1809_s3, %s1810_s14  }
 0x2ce   :  { %1799 = dma.done.wait [#allocation4], 256  }
 0x2cf   :  { %1800 = vsyncadd [#allocation4], 4294967040 }
 0x2d0   :  { %1306 = vsyncpa [#allocation3], 1 }
 0x2d1   :  { %1307 = vsyncpa [#allocation6], 1 }
 0x2d2   :  { %1308 = vsyncpa [#allocation9], 1 }
 0x2d3   :  { %1309 = vsyncpa [#allocation4], 1 }

</bundles_post_ra>
